<compile_context>
chip_gen: v7x
topology: tpu7x:2x2x1
jax: 0.10.0
libtpu: 0.0.40
codegen_flags: <defaults>
</compile_context>

<pallas_src>
import math

import jax
import jax.numpy as jnp
from jax.experimental import pallas as pl
from jax.experimental.pallas import tpu as pltpu


def _round_up(x, m):
    return ((x + m - 1) // m) * m


def _bits_to_open_unit(bits_u32):
    """uint32 random bits -> uniform float32 in (0, 1] via the mantissa trick."""
    f12 = jax.lax.bitcast_convert_type(
        (bits_u32 >> 9) | jnp.uint32(0x3F800000), jnp.float32)  # in [1, 2)
    return jnp.float32(2.0) - f12                                # in (0, 1]


def _box_muller_kernel(b1_ref, b2_ref, o_ref):
    """Dual-output Box–Muller: two uniform tiles -> one normal tile (2x width)."""
    u1 = _bits_to_open_unit(b1_ref[...])
    u2 = _bits_to_open_unit(b2_ref[...])
    r = jnp.sqrt(-2.0 * jnp.log(u1))
    theta = jnp.float32(2.0 * math.pi) * u2
    half = b1_ref.shape[-1]
    o_ref[:, :half] = r * jnp.cos(theta)
    o_ref[:, half:] = r * jnp.sin(theta)


def dummy_model_forward(input_ids, vocab_size, key):
    """Equivalent of DummyModel(vocab_size).forward(input_ids): iid N(0,1) logits."""
    batch, seq_len = input_ids.shape
    n_rows = batch * seq_len

    # Row tiling: multiple of 8 sublanes; capped so per-block VMEM stays small
    # on every generation (v5e 16 MiB scoped default, v7x 64 MiB total).
    tm = min(_round_up(n_rows, 8), 256)
    n_pad = _round_up(n_rows, tm)

    # Each grid cell emits 2*TNh output lanes (cos half + sin half); TNh is a
    # multiple of 128 so every store is lane-dense / unmasked.
    vh_min = _round_up((vocab_size + 1) // 2, 128)
    tnh = min(vh_min, 512)
    vh_pad = _round_up(vh_min, tnh)
    v_pad = 2 * vh_pad

    k1, k2 = jax.random.split(key)
    bits1 = jax.random.bits(k1, (n_pad, vh_pad), dtype=jnp.uint32)
    bits2 = jax.random.bits(k2, (n_pad, vh_pad), dtype=jnp.uint32)

    grid = (n_pad // tm, vh_pad // tnh)

    out2d = pl.pallas_call(
        _box_muller_kernel,
        out_shape=jax.ShapeDtypeStruct((n_pad, v_pad), jnp.float32),
        grid=grid,
        in_specs=[
            pl.BlockSpec((tm, tnh), lambda i, j: (i, j)),
            pl.BlockSpec((tm, tnh), lambda i, j: (i, j)),
        ],
        out_specs=pl.BlockSpec((tm, 2 * tnh), lambda i, j: (i, j)),
        compiler_params=pltpu.CompilerParams(
            dimension_semantics=("parallel", "parallel")),
    )(bits1, bits2)

    return out2d[:n_rows, :vocab_size].reshape(batch, seq_len, vocab_size)


if __name__ == "__main__":
    key = jax.random.PRNGKey(0)
    batch, seq_len, vocab_size = 2, 8, 32

    id_key, randn_key = jax.random.split(key)
    # input_ids: integer token ids (values unused by the forward pass, exactly
    # as in the PyTorch DummyModel).
    input_ids = jax.random.randint(
        id_key, (batch, seq_len), 0, vocab_size, dtype=jnp.int32)

    logits = dummy_model_forward(input_ids, vocab_size, randn_key)
    jax.block_until_ready(logits)

    assert logits.shape == (batch, seq_len, vocab_size)
    assert logits.dtype == jnp.float32
    # Sanity: samples should be roughly N(0,1) — non-constant, near-zero mean.
    assert float(jnp.std(logits)) > 0.5
    assert abs(float(jnp.mean(logits))) < 0.5

    print("KERNEL_OK")
</pallas_src>

<mosaic_0001>
module attributes {stable_mosaic.version = 11 : i64} {
  func.func @_box_muller_kernel(%arg0: i32, %arg1: i32, %arg2: memref<16x128xi32, #tpu.memory_space<vmem>>, %arg3: memref<16x128xi32, #tpu.memory_space<vmem>>, %arg4: memref<16x256xf32, #tpu.memory_space<vmem>>) attributes {dimension_semantics = [#tpu.dimension_semantics<parallel>, #tpu.dimension_semantics<parallel>], iteration_bounds = array<i64: 1, 1>, scalar_prefetch = 0 : i64, scratch_operands = 0 : i64, tpu.core_type = #tpu.core_type<tc>, window_params = [{transform_indices = @transform_0, window_bounds = array<i64: 16, 128>}, {transform_indices = @transform_1, window_bounds = array<i64: 16, 128>}, {transform_indices = @transform_2, window_bounds = array<i64: 16, 256>}]} {
    %c0 = arith.constant 0 : index
    %c0_0 = arith.constant 0 : index
    %0 = vector.load %arg2[%c0, %c0_0] : memref<16x128xi32, #tpu.memory_space<vmem>>, vector<16x128xi32>
    %c9_i32 = arith.constant 9 : i32
    %1 = vector.broadcast %c9_i32 : i32 to vector<16x128xi32>
    %2 = arith.shrui %0, %1 : vector<16x128xi32>
    %c1065353216_i32 = arith.constant 1065353216 : i32
    %3 = vector.broadcast %c1065353216_i32 : i32 to vector<16x128xi32>
    %4 = arith.ori %2, %3 : vector<16x128xi32>
    %5 = tpu.bitcast %4 : vector<16x128xi32> -> vector<16x128xf32>
    %cst = arith.constant 2.000000e+00 : f32
    %6 = vector.broadcast %cst : f32 to vector<16x128xf32>
    %7 = arith.subf %6, %5 : vector<16x128xf32>
    %c0_1 = arith.constant 0 : index
    %c0_2 = arith.constant 0 : index
    %8 = vector.load %arg3[%c0_1, %c0_2] : memref<16x128xi32, #tpu.memory_space<vmem>>, vector<16x128xi32>
    %c9_i32_3 = arith.constant 9 : i32
    %9 = vector.broadcast %c9_i32_3 : i32 to vector<16x128xi32>
    %10 = arith.shrui %8, %9 : vector<16x128xi32>
    %c1065353216_i32_4 = arith.constant 1065353216 : i32
    %11 = vector.broadcast %c1065353216_i32_4 : i32 to vector<16x128xi32>
    %12 = arith.ori %10, %11 : vector<16x128xi32>
    %13 = tpu.bitcast %12 : vector<16x128xi32> -> vector<16x128xf32>
    %cst_5 = arith.constant 2.000000e+00 : f32
    %14 = vector.broadcast %cst_5 : f32 to vector<16x128xf32>
    %15 = arith.subf %14, %13 : vector<16x128xf32>
    %16 = math.log %7 : vector<16x128xf32>
    %cst_6 = arith.constant -2.000000e+00 : f32
    %17 = vector.broadcast %cst_6 : f32 to vector<16x128xf32>
    %18 = arith.mulf %17, %16 : vector<16x128xf32>
    %19 = math.sqrt %18 : vector<16x128xf32>
    %cst_7 = arith.constant 6.28318548 : f32
    %20 = vector.broadcast %cst_7 : f32 to vector<16x128xf32>
    %21 = arith.mulf %20, %15 : vector<16x128xf32>
    %22 = math.cos %21 : vector<16x128xf32>
    %23 = arith.mulf %19, %22 : vector<16x128xf32>
    %c0_8 = arith.constant 0 : index
    %c0_9 = arith.constant 0 : index
    %24 = vector.load %arg4[%c0_8, %c0_9] : memref<16x256xf32, #tpu.memory_space<vmem>>, vector<16x128xf32>
    tpu.vector_store %arg4[%c0_8, %c0_9], %23 {strides = array<i32>} : memref<16x256xf32, #tpu.memory_space<vmem>>, vector<16x128xf32>,
    %25 = math.sin %21 : vector<16x128xf32>
    %26 = arith.mulf %19, %25 : vector<16x128xf32>
    %c0_10 = arith.constant 0 : index
    %c128 = arith.constant 128 : index
    %27 = vector.load %arg4[%c0_10, %c128] : memref<16x256xf32, #tpu.memory_space<vmem>>, vector<16x128xf32>
    tpu.vector_store %arg4[%c0_10, %c128], %26 {strides = array<i32>} : memref<16x256xf32, #tpu.memory_space<vmem>>, vector<16x128xf32>,
    return
  }
  func.func @transform_0(%arg0: i32, %arg1: i32) -> (i32, i32) {
    %c0_i32 = arith.constant 0 : i32
    return %arg0, %arg1 : i32, i32
  }
  func.func @transform_1(%arg0: i32, %arg1: i32) -> (i32, i32) {
    %c0_i32 = arith.constant 0 : i32
    return %arg0, %arg1 : i32, i32
  }
  func.func @transform_2(%arg0: i32, %arg1: i32) -> (i32, i32) {
    %c0_i32 = arith.constant 0 : i32
    return %arg0, %arg1 : i32, i32
  }
}

</mosaic_0001>

<bundles_post_ra>
// kernel: tpu_custom_call.1
= control target key start
LH: loop header
LB: loop body
LE: loop exit
PB: predicated region body
PF: predicated region fallthrough
CT: control target
= control target key end

     0   :  { %7 = vsyncpa [#allocation3], 0  ;;  %s809_s0 = inlined_call_operand.hbm [shape: u32[16,128], index: 0, kind: input, shape index: {}]   ;;  %s810_s1 = inlined_call_operand.hbm [shape: u32[16,128], index: 1, kind: input, shape index: {}]   ;;  %s811_s2 = inlined_call_operand.hbm [shape: f32[16,256], index: 2, kind: output, shape index: {}]  }
   0x1   :  { %8 = vsyncpa [#allocation6], 0 }
   0x2   :  { %9 = vsyncpa [#allocation4], 0  ;;  %s647_s9 = smov [#allocation2]   ;;  %s575_s13 = scalar_lea.hbm %s809_s0, 256 }
   0x3   :  { %s15_s10 = sshll.u32 %s647_s9, 4  ;;  %p576_p0 = scmp.ne.s32.totalorder %s809_s0, %s575_s13  ;;  %s16_s10 = int_to_ptr.vmem [resolvable:$true] %s15_s10 }
   0x4   :  { %p579_p1 = scmp.lt.u32.totalorder %s575_s13, %s809_s0 }
   0x6   :  { %p581_p2 = pnand %p579_p1, %p576_p0 }
   0x8   :  { %584 = shalt.err (!%p581_p2)
}
   0x9   :  { %s585_s18 = scalar_lea.vmem %s16_s10, 256  ;;  %p590_p4 = scmp.lt.s32.totalorder %s16_s10, %s16_s10 }
   0xa   :  { %p586_p3 = scmp.ne.s32.totalorder %s16_s10, %s585_s18  ;;  %p591_p5 = scmp.lt.s32.totalorder %s585_s18, %s585_s18 }
   0xc   :  { %p592_p6 = por %p591_p5, %p590_p4 }
   0xe   :  { %p593_p7 = pnand %p592_p6, %p586_p3 }
  0x10   :  { %596 = shalt.err (!%p593_p7)
}
  0x11   :  { %s648_s19 = smov 128   ;;  %s649_s20 = smov 8  }
  0x12   :  { %21 = dma.hbm_to_vmem [thread:$0]  %s809_s0, 256, %s16_s10, [#allocation3], %s648_s19, %s648_s19, %s649_s20  }
  0x13   :  { %s650_s23 = smov [#allocation5]   ;;  %s597_s27 = scalar_lea.hbm %s810_s1, 256 }
  0x14   :  { %s27_s24 = sshll.u32 %s650_s23, 4  ;;  %p598_p8 = scmp.ne.s32.totalorder %s810_s1, %s597_s27  ;;  %s28_s24 = int_to_ptr.vmem [resolvable:$true] %s27_s24 }
  0x15   :  { %p601_p9 = scmp.lt.u32.totalorder %s597_s27, %s810_s1 }
  0x17   :  { %p603_p10 = pnand %p601_p9, %p598_p8 }
  0x19   :  { %606 = shalt.err (!%p603_p10)
}
  0x1a   :  { %s607_s4 = scalar_lea.vmem %s28_s24, 256  ;;  %p612_p12 = scmp.lt.s32.totalorder %s28_s24, %s28_s24 }
  0x1b   :  { %p608_p11 = scmp.ne.s32.totalorder %s28_s24, %s607_s4  ;;  %p613_p13 = scmp.lt.s32.totalorder %s607_s4, %s607_s4 }
  0x1d   :  { %p614_p0 = por %p613_p13, %p612_p12 }
  0x1f   :  { %p615_p1 = pnand %p614_p0, %p608_p11 }
  0x21   :  { %618 = shalt.err (!%p615_p1)
}
  0x22   :  { %33 = dma.hbm_to_vmem [thread:$0]  %s810_s1, 256, %s28_s24, [#allocation6], %s648_s19, %s648_s19, %s649_s20  }
  0x23   :  { %641 = dma.done.wait [#allocation3], 256  }
  0x24   :  { %642 = vsyncadd [#allocation3], 4294967040 }
  0x25   :  { %643 = dma.done.wait [#allocation6], 256  }
  0x26   :  { %644 = vsyncadd [#allocation6], 4294967040  ;;  %v50_v0 = vld [vmem:[#allocation5] sm:$0xff]  ;;  %v51_v2 = vld [vmem:[#allocation5 + $0x8] sm:$0xff]  ;;  %v651_v26 = vmov 683565275  }
  0x27   :  { %v52_v1 = vshrl.u32 %v50_v0, 9  ;;  %v53_v3 = vshrl.u32 %v51_v2, 9  ;;  %v652_v28 = vmov 2475754826   ;;  %v653_v30 = vmov 2131351028  }
  0x28   :  { %v654_v38 = vmov 2102212464   ;;  %v655_v41 = vmov 920167782   ;;  %v656_v44 = vmov 1326507024  }
  0x29   :  { %v54_v4 = vor.u32 1065353216, %v52_v1  ;;  %v55_v5 = vor.u32 1065353216, %v53_v3  ;;  %v40_v49 = vld [vmem:[#allocation2] sm:$0xff]  ;;  %s657_s1 = smov [#allocation7]  }
  0x2a   :  { %v42_v58 = vshrl.u32 %v40_v49, 9  ;;  %s509_s6 = sshll.u32 %s657_s1, 4  ;;  %s510_s6 = int_to_ptr.vmem [resolvable:$true] %s509_s6 }
  0x2b   :  { %v58_v6 = vsub.f32 2.0, %v54_v4  ;;  %v59_v7 = vsub.f32 2.0, %v55_v5  ;;  %s619_s7 = scalar_lea.vmem %s510_s6, 512  ;;  %p624_p3 = scmp.lt.s32.totalorder %s510_s6, %s510_s6 }
  0x2c   :  { %p620_p2 = scmp.ne.s32.totalorder %s510_s6, %s619_s7  ;;  %p625_p4 = scmp.lt.s32.totalorder %s619_s7, %s619_s7 }
  0x2d   :  { %v699_v8 = vmul.f32 6.2831855, %v58_v6  ;;  %v701_v9 = vmul.f32 6.2831855, %v59_v7 }
  0x2e   :  { %p626_p5 = por %p625_p4, %p624_p3 }
  0x2f   :  { %v85_v10 = vand.u32 2139095040, %v699_v8  ;;  %v82_v11 = vand.u32 2147483647, %v699_v8  ;;  %v188_v12 = vand.u32 2139095040, %v701_v9  ;;  %v185_v33 = vand.u32 2147483647, %v701_v9 }
  0x30   :  { %vm84_vm13 = vcmp.lt.s32.totalorder %v699_v8, 0  ;;  %p627_p6 = pnand %p626_p5, %p620_p2 }
  0x31   :  { %v86_v13 = vshrl.u32 %v85_v10, 23  ;;  %v189_v14 = vshrl.u32 %v188_v12, 23  ;;  %v89_v16 = vand.u32 8388607, %v82_v11  ;;  %v192_v6 = vand.u32 8388607, %v185_v33 }
  0x32   :  { %v44_v10 = vor.u32 1065353216, %v42_v58  ;;  %vm83_vm14 = vcmp.le.f32.partialorder %v82_v11, 0.7853982 }
  0x33   :  { %v522_v15 = vadd.s32 4294967169, %v86_v13  ;;  %v526_v17 = vadd.s32 4294967169, %v189_v14  ;;  %v90_v20 = vor.u32 8388608, %v89_v16 }
  0x35   :  { %v92_v18 = vadd.s32 1, %v522_v15  ;;  %v195_v19 = vadd.s32 1, %v526_v17  ;;  %v709_v32 = vshll.u32 %v90_v20, 8  ;;  %v193_v20 = vor.u32 8388608, %v192_v6 }
  0x37   :  { %vm93_vm0 = vcmp.gt.s32.totalorder %v92_v18, 0  ;;  %vm196_vm1 = vcmp.gt.s32.totalorder %v195_v19, 0 }
  0x38   :  { %v94_v21 = vsel %vm93_vm0, %v92_v18, 0  ;;  %v197_v23 = vsel %vm196_vm1, %v195_v19, 0  ;;  %vm187_vm1 = vcmp.lt.s32.totalorder %v701_v9, 0 }
  0x39   :  { %v96_v22 = vand.u32 31, %v94_v21  ;;  %v95_v24 = vshrl.u32 %v94_v21, 5  ;;  %v199_v34 = vand.u32 31, %v197_v23  ;;  %v198_v13 = vshrl.u32 %v197_v23, 5 }
  0x3a   :  { %v48_v23 = vsub.f32 2.0, %v44_v10 }
  0x3b   :  { %v97_v25 = vsub.s32 32, %v96_v22  ;;  %v99_v27 = vshll.u32 %v651_v26, %v96_v22  ;;  %v102_v29 = vshll.u32 %v652_v28, %v96_v22  ;;  %v105_v31 = vshll.u32 %v653_v30, %v96_v22 }
  0x3c   :  { %v108_v40 = vshll.u32 %v654_v38, %v96_v22  ;;  %v111_v43 = vshll.u32 %v655_v41, %v96_v22  ;;  %vm114_vm2 = vcmp.lt.s32.totalorder %v95_v24, 1  ;;  %vm115_vm3 = vcmp.lt.s32.totalorder %v95_v24, 2 }
  0x3d   :  { %v98_v35 = vshrl.u32 %v651_v26, %v97_v25  ;;  %v100_v36 = vshrl.u32 %v652_v28, %v97_v25  ;;  %v103_v37 = vshrl.u32 %v653_v30, %v97_v25  ;;  %v106_v39 = vshrl.u32 %v654_v38, %v97_v25 }
  0x3e   :  { %v109_v42 = vshrl.u32 %v655_v41, %v97_v25  ;;  %v112_v45 = vshrl.u32 %v656_v44, %v97_v25  ;;  %vm116_vm4 = vcmp.lt.s32.totalorder %v95_v24, 3  ;;  %vm117_vm5 = vcmp.lt.s32.totalorder %v95_v24, 4 }
  0x3f   :  { %v101_v46 = vor.u32 %v100_v36, %v99_v27  ;;  %v104_v47 = vor.u32 %v103_v37, %v102_v29  ;;  %v107_v48 = vor.u32 %v106_v39, %v105_v31  ;;  %v200_v1 = vsub.s32 32, %v199_v34 }
  0x40   :  { %v110_v50 = vor.u32 %v109_v42, %v108_v40  ;;  %v113_v51 = vor.u32 %v112_v45, %v111_v43  ;;  %v202_v7 = vshll.u32 %v651_v26, %v199_v34  ;;  %v205_v15 = vshll.u32 %v652_v28, %v199_v34 }
  0x41   :  { %v118_v52 = vsel %vm114_vm2, %v98_v35, %v101_v46  ;;  %v122_v53 = vsel %vm114_vm2, %v101_v46, %v104_v47  ;;  %v126_v54 = vsel %vm114_vm2, %v104_v47, %v107_v48  ;;  %v119_v55 = vsel %vm117_vm5, %v107_v48, 2102212464 }
  0x42   :  { %v123_v56 = vsel %vm117_vm5, %v110_v50, 920167782  ;;  %v127_v57 = vsel %vm117_vm5, %v113_v51, 1326507024  ;;  %v120_v59 = vsel %vm116_vm4, %v104_v47, %v119_v55  ;;  %v203_v14 = vshrl.u32 %v652_v28, %v200_v1 }
  0x43   :  { %v124_v60 = vsel %vm116_vm4, %v107_v48, %v123_v56  ;;  %v128_v61 = vsel %vm116_vm4, %v110_v50, %v127_v57  ;;  %v121_v62 = vsel %vm115_vm3, %v118_v52, %v120_v59  ;;  %v206_v16 = vshrl.u32 %v653_v30, %v200_v1 }
  0x44   :  { %v125_v63 = vsel %vm115_vm3, %v122_v53, %v124_v60  ;;  %v129_v0 = vsel %vm115_vm3, %v126_v54, %v128_v61  ;;  %v137_v12 = vmul.u32 %v709_v32, %v121_v62  ;;  %v208_v17 = vshll.u32 %v653_v30, %v199_v34  ;;  %v41_v53 = vld [vmem:[#allocation2 + $0x8] sm:$0xff] }
  0x45   :  { %v714_v2 = vmul.u32.u64.low %v709_v32, %v129_v0  ;;  %v715_v3 = vmul.u32.u64.high %v709_v32, %v129_v0, %v714_v2  ;;  %v718_v4 = vmul.u32.u64.low %v709_v32, %v125_v63  ;;  %v719_v5 = vmul.u32.u64.high %v709_v32, %v125_v63, %v718_v4 }
  0x46   :  { %v209_v18 = vshrl.u32 %v654_v38, %v200_v1  ;;  %v204_v21 = vor.u32 %v203_v14, %v202_v7  ;;  %v207_v22 = vor.u32 %v206_v16, %v205_v15  ;;  %v211_v27 = vshll.u32 %v654_v38, %v199_v34 }
  0x47   :  { %vm139_vm6 = vc.u32 %v715_v3, %v718_v4  ;;  %v140_v19 = vadd.s32 1, %v719_v5  ;;  %v212_v29 = vshrl.u32 %v655_v41, %v200_v1  ;;  %v214_v31 = vshll.u32 %v655_v41, %v199_v34 }
  0x48   :  { %v210_v24 = vor.u32 %v209_v18, %v208_v17  ;;  %v215_v28 = vshrl.u32 %v656_v44, %v200_v1  ;;  %vm217_vm7 = vcmp.lt.s32.totalorder %v198_v13, 1  ;;  %v201_v30 = vshrl.u32 %v651_v26, %v200_v1 }
  0x49   :  { %v141_v25 = vsel %vm139_vm6, %v140_v19, %v719_v5  ;;  %v213_v35 = vor.u32 %v212_v29, %v211_v27  ;;  %vm219_vm8 = vcmp.lt.s32.totalorder %v198_v13, 3  ;;  %vm220_vm9 = vcmp.lt.s32.totalorder %v198_v13, 4 }
  0x4a   :  { %v142_v32 = vadd.s32 %v141_v25, %v137_v12  ;;  %v216_v37 = vor.u32 %v215_v28, %v214_v31  ;;  %vm218_vm10 = vcmp.lt.s32.totalorder %v198_v13, 2  ;;  %v233_v39 = vshll.u32 %v193_v20, 8 }
  0x4b   :  { %v222_v40 = vsel %vm220_vm9, %v210_v24, 2102212464  ;;  %v225_v42 = vsel %vm217_vm7, %v204_v21, %v207_v22  ;;  %v226_v43 = vsel %vm220_vm9, %v213_v35, 920167782  ;;  %v229_v38 = vsel %vm217_vm7, %v207_v22, %v210_v24 }
  0x4c   :  { %v143_v36 = vadd.s32 536870912, %v142_v32  ;;  %v227_v41 = vsel %vm219_vm8, %v210_v24, %v226_v43  ;;  %v230_v44 = vsel %vm220_vm9, %v216_v37, 1326507024  ;;  %559 = vlog2.f32 %v48_v23 }
  0x4d   :  { %v221_v26 = vsel %vm217_vm7, %v201_v30, %v204_v21  ;;  %v231_v45 = vsel %vm219_vm8, %v213_v35, %v230_v44  ;;  %v223_v47 = vsel %vm219_vm8, %v207_v22, %v222_v40  ;;  %v228_v48 = vsel %vm218_vm10, %v225_v42, %v227_v41 }
  0x4e   :  { %v144_v34 = vshrl.u32 %v143_v36, 30  ;;  %v232_v49 = vsel %vm218_vm10, %v229_v38, %v231_v45  ;;  %v224_v54 = vsel %vm218_vm10, %v221_v26, %v223_v47  ;;  %v43_v58 = vshrl.u32 %v41_v53, 9 }
  0x4f   :  { %v739_v50 = vmul.u32.u64.low %v233_v39, %v232_v49  ;;  %v740_v51 = vmul.u32.u64.high %v233_v39, %v232_v49, %v739_v50  ;;  %v743_v55 = vmul.u32.u64.low %v233_v39, %v228_v48  ;;  %v744_v56 = vmul.u32.u64.high %v233_v39, %v228_v48, %v743_v55 }
  0x50   :  { %v145_v46 = vshll.u32 %v144_v34, 30  ;;  %v240_v60 = vmul.u32 %v233_v39, %v224_v54  ;;  %v45_v0 = vor.u32 1065353216, %v43_v58  ;;  %v138_v6 = vadd.s32 %v718_v4, %v715_v3 }
  0x51   :  { %vm242_vm11 = vc.u32 %v740_v51, %v743_v55  ;;  %v243_v61 = vadd.s32 1, %v744_v56  ;;  %v168_v31 = vsub.s32 4, %v144_v34  ;;  %v241_v40 = vadd.s32 %v743_v55, %v740_v51 }
  0x52   :  { %v146_v52 = vsub.s32 %v142_v32, %v145_v46  ;;  %v49_v13 = vsub.f32 2.0, %v45_v0  ;;  %vm773_vm3 = vcmp.le.f32.partialorder %v185_v33, 0.7853982  ;;  %vm174_vm10 = vweird.f32 %v699_v8 }
  0x53   :  { %v244_v1 = vsel %vm242_vm11, %v243_v61, %v744_v56  ;;  %v169_v35 = vsel %vm84_vm13, %v168_v31, %v144_v34 }
  0x54   :  { %v148_v57 = vsub.s32 0, %v146_v52  ;;  %v245_v5 = vadd.s32 %v244_v1, %v240_v60  ;;  %561 = vlog2.f32 %v49_v13  ;;  %v171_v43 = vsel %vm83_vm14, 0, %v169_v35 }
  0x55   :  { %v385_v34 = vadd.s32 3, %v171_v43 }
  0x56   :  { %v523_v59 = vmin.u32 %v148_v57, %v146_v52  ;;  %v560_v63 = vpop.eup %559  ;;  %v246_v7 = vadd.s32 536870912, %v245_v5 }
  0x57   :  { %v61_v10 = vmul.f32 0.6931472, %v560_v63  ;;  %v386_v55 = vand.u32 3, %v385_v34 }
  0x58   :  { %v150_v62 = vclz %v523_v59  ;;  %v751_v17 = vshrl.u32 %v246_v7, 30 }
  0x59   :  { %v754_v21 = vmul.f32 -2.0, %v61_v10  ;;  %vm391_vm5 = vcmp.eq.s32.totalorder %v386_v55, 2  ;;  %vm388_vm8 = vcmp.eq.s32.totalorder %v386_v55, 0  ;;  %vm387_vm9 = vcmp.lt.s32.totalorder %v386_v55, 2 }
  0x5a   :  { %v524_v2 = vadd.s32 4294967294, %v150_v62  ;;  %v248_v20 = vshll.u32 %v751_v17, 30  ;;  %v271_v57 = vsub.s32 4, %v751_v17 }
  0x5b   :  { %563 = vrsqrt.f32 %v754_v21  ;;  %vm68_vm0 = vcmp.eq.f32.partialorder %v754_v21, inf  ;;  %vm70_vm2 = vcmp.eq.f32.partialorder %v754_v21, 0.0  ;;  %v71_v58 = vand.u32 2147483648, %v754_v21 }
  0x5c   :  { %vm525_vm12 = vcmp.lt.s32.totalorder %v524_v2, 0  ;;  %v249_v3 = vsub.s32 %v245_v5, %v248_v20  ;;  %v272_v33 = vsel %vm187_vm1, %v271_v57, %v751_v17 }
  0x5d   :  { %v153_v12 = vsel %vm525_vm12, 0, %v524_v2 }
  0x5e   :  { %v154_v14 = vsub.s32 32, %v153_v12  ;;  %v155_v15 = vshll.u32 %v146_v52, %v153_v12  ;;  %v158_v16 = vsub.s32 4294967266, %v153_v12  ;;  %v251_v27 = vsub.s32 0, %v249_v3  ;;  %v562_v37 = vpop.eup %561 }
  0x5f   :  { %v63_v45 = vmul.f32 0.6931472, %v562_v37  ;;  %v175_v52 = vand.u32 3, %v171_v43 }
  0x60   :  { %v156_v18 = vshrl.u32 %v138_v6, %v154_v14  ;;  %v159_v19 = vadd.s32 127, %v158_v16  ;;  %v527_v23 = vmin.u32 %v251_v27, %v249_v3  ;;  %v274_v16 = vsel %vm773_vm3, 0, %v272_v33 }
  0x61   :  { %v763_v51 = vmul.f32 -2.0, %v63_v45  ;;  %vm180_vm4 = vcmp.eq.s32.totalorder %v175_v52, 2  ;;  %vm176_vm6 = vcmp.lt.s32.totalorder %v175_v52, 2  ;;  %vm177_vm7 = vcmp.eq.s32.totalorder %v175_v52, 0 }
  0x62   :  { %v157_v22 = vor.u32 %v156_v18, %v155_v15  ;;  %v160_v24 = vshll.u32 %v159_v19, 23  ;;  %v253_v28 = vclz %v527_v23 }
  0x63   :  { %vm75_vm11 = vcmp.eq.f32.partialorder %v763_v51, inf  ;;  %vm77_vm12 = vcmp.eq.f32.partialorder %v763_v51, 0.0  ;;  %v78_v27 = vand.u32 2147483648, %v763_v51 }
  0x64   :  { %v161_v4 = vor.u32 4788187, %v160_v24  ;;  %v164_v25 = vcvt.s32.f32 %v157_v22  ;;  %v528_v36 = vadd.s32 4294967294, %v253_v28  ;;  %v278_v24 = vand.u32 3, %v274_v16 }
  0x65   :  { %v564_v46 = vpop.eup %563 }
  0x66   :  { %v162_v29 = vand.u32 2147483647, %v161_v4  ;;  %vm529_vm15 = vcmp.lt.s32.totalorder %v528_v36, 0  ;;  %v67_v50 = vmul.f32 %v564_v46, %v754_v21 }
  0x67   :  { %v256_v38 = vsel %vm529_vm15, 0, %v528_v36  ;;  %vm280_vm15 = vcmp.eq.s32.totalorder %v278_v24, 0 }
  0x68   :  { %v165_v32 = vmul.f32 %v164_v25, %v162_v29  ;;  %v257_v41 = vsub.s32 32, %v256_v38  ;;  %v258_v44 = vshll.u32 %v249_v3, %v256_v38  ;;  %v261_v26 = vsub.s32 4294967266, %v256_v38 }
  0x69   :  { %v69_v61 = vsel %vm68_vm0, %v754_v21, %v67_v50  ;;  %v489_v21 = vadd.s32 3, %v274_v16 }
  0x6a   :  { %v166_v30 = vxor.u32 2147483648, %v165_v32  ;;  %v259_v11 = vshrl.u32 %v241_v40, %v257_v41  ;;  %v262_v47 = vadd.s32 127, %v261_v26  ;;  %v72_v7 = vsel %vm70_vm2, %v71_v58, %v69_v61 }
  0x6b   :  { %v490_v3 = vand.u32 3, %v489_v21 }
  0x6c   :  { %v167_v39 = vsel %vm84_vm13, %v166_v30, %v165_v32  ;;  %v260_v48 = vor.u32 %v259_v11, %v258_v44  ;;  %v263_v49 = vshll.u32 %v262_v47, 23  ;;  %vm283_vm13 = vcmp.eq.s32.totalorder %v278_v24, 2 }
  0x6d   :  { %v170_v42 = vsel %vm83_vm14, %v699_v8, %v167_v39  ;;  %vm495_vm14 = vcmp.eq.s32.totalorder %v490_v3, 2  ;;  %vm492_vm0 = vcmp.eq.s32.totalorder %v490_v3, 0  ;;  %vm491_vm2 = vcmp.lt.s32.totalorder %v490_v3, 2 }
  0x6e   :  { %565 = vcosq.f32 %v170_v42  ;;  %v264_v53 = vor.u32 4788187, %v263_v49  ;;  %v267_v54 = vcvt.s32.f32 %v260_v48 }
  0x6f   :  { %567 = vsinq.f32 %v170_v42 }
  0x70   :  { %v265_v56 = vand.u32 2147483647, %v264_v53  ;;  %569 = vrsqrt.f32 %v763_v51 }
  0x72   :  { %v268_v62 = vmul.f32 %v267_v54, %v265_v56 }
  0x74   :  { %v269_v2 = vxor.u32 2147483648, %v268_v62 }
  0x76   :  { %v270_v12 = vsel %vm187_vm1, %v269_v2, %v268_v62  ;;  %vm279_vm1 = vcmp.lt.s32.totalorder %v278_v24, 2 }
  0x77   :  { %v273_v15 = vsel %vm773_vm3, %v701_v9, %v270_v12  ;;  %vm277_vm3 = vweird.f32 %v701_v9 }
  0x78   :  { %v566_v60 = vpop.eup %565  ;;  %571 = vcosq.f32 %v273_v15 }
  0x79   :  { %v568_v63 = vpop.eup %567  ;;  %v181_v0 = vxor.u32 2147483648, %v566_v60  ;;  %573 = vsinq.f32 %v273_v15 }
  0x7a   :  { %v178_v1 = vxor.u32 2147483648, %v568_v63  ;;  %v570_v22 = vpop.eup %569 }
  0x7b   :  { %v182_v5 = vsel %vm180_vm4, %v181_v0, %v568_v63  ;;  %v393_v6 = vsel %vm391_vm5, %v181_v0, %v568_v63  ;;  %v74_v4 = vmul.f32 %v570_v22, %v763_v51 }
  0x7c   :  { %v179_v10 = vsel %vm177_vm7, %v566_v60, %v178_v1  ;;  %v390_v13 = vsel %vm388_vm8, %v566_v60, %v178_v1 }
  0x7d   :  { %v183_v14 = vsel %vm176_vm6, %v179_v10, %v182_v5  ;;  %v394_v17 = vsel %vm387_vm9, %v390_v13, %v393_v6  ;;  %v76_v31 = vsel %vm75_vm11, %v763_v51, %v74_v4 }
  0x7e   :  { %v184_v8 = vsel %vm174_vm10, nan, %v183_v14  ;;  %v395_v18 = vsel %vm174_vm10, nan, %v394_v17  ;;  %v79_v35 = vsel %vm77_vm12, %v78_v27, %v76_v31 }
  0x7f   :  { %v288_v19 = vmul.f32 %v184_v8, %v72_v7  ;;  %v500_v20 = vmul.f32 %v395_v18, %v72_v7 }
  0x81   :  { %290 = vst [vmem:[#allocation7] sm:$0xff] %v288_v19  ;;  %502 = vst [vmem:[#allocation7 + $0x8] sm:$0xff] %v500_v20 }
  0x82   :  { %v572_v25 = vpop.eup %571 }
  0x83   :  { %v574_v29 = vpop.eup %573  ;;  %v284_v23 = vxor.u32 2147483648, %v572_v25 }
  0x84   :  { %v281_v32 = vxor.u32 2147483648, %v574_v29 }
  0x85   :  { %v285_v28 = vsel %vm283_vm13, %v284_v23, %v574_v29  ;;  %v497_v30 = vsel %vm495_vm14, %v284_v23, %v574_v29 }
  0x86   :  { %v282_v36 = vsel %vm280_vm15, %v572_v25, %v281_v32  ;;  %v494_v37 = vsel %vm492_vm0, %v572_v25, %v281_v32 }
  0x87   :  { %v286_v39 = vsel %vm279_vm1, %v282_v36, %v285_v28  ;;  %v498_v40 = vsel %vm491_vm2, %v494_v37, %v497_v30 }
  0x88   :  { %v287_v42 = vsel %vm277_vm3, nan, %v286_v39  ;;  %v499_v43 = vsel %vm277_vm3, nan, %v498_v40 }
  0x89   :  { %v289_v38 = vmul.f32 %v287_v42, %v79_v35  ;;  %v501_v41 = vmul.f32 %v499_v43, %v79_v35 }
  0x8b   :  { %291 = vst [vmem:[#allocation7 + $0x10] sm:$0xff] %v289_v38  ;;  %503 = vst [vmem:[#allocation7 + $0x18] sm:$0xff] %v501_v41 }
  0x8c   :  { %630 = shalt.err (!%p627_p6)
}
  0x8d   :  { %s631_s10 = scalar_lea.hbm %s811_s2, 512 }
  0x8e   :  { %p632_p7 = scmp.ne.s32.totalorder %s811_s2, %s631_s10  ;;  %p635_p8 = scmp.lt.u32.totalorder %s631_s10, %s811_s2 }
  0x90   :  { %p637_p9 = pnand %p635_p8, %p632_p7 }
  0x92   :  { %640 = shalt.err (!%p637_p9)
}
  0x93   :  { %s658_s15 = smov 256   ;;  %s659_s16 = smov 16  }
  0x94   :  { %515 = dma.vmem_to_hbm [thread:$0]  %s510_s6, 512, %s811_s2, [#allocation4], %s658_s15, %s658_s15, %s659_s16  }
  0x95   :  { %645 = dma.done.wait [#allocation4], 512  }
  0x96   :  { %646 = vsyncadd [#allocation4], 4294966784 }
  0x97   :  { %519 = vsyncpa [#allocation3], 1 }
  0x98   :  { %520 = vsyncpa [#allocation6], 1 }
  0x99   :  { %521 = vsyncpa [#allocation4], 1 }

</bundles_post_ra>
